<compile_context>
chip_gen: v5e
topology: v5e:2x2
jax: 0.10.0
libtpu: 0.0.40
codegen_flags: <defaults>
</compile_context>

<pallas_src>
import functools
import math

import jax
import jax.numpy as jnp
from jax.experimental import pallas as pl
from jax.experimental.pallas import tpu as pltpu

_LANE = 128
_SUBLANE = 8
_BLOCK_BYTES = 4 * 1024 * 1024   # per-block input cap; 2x buffered fits every gen
_SPLIT_BYTES = 1 * 1024 * 1024   # slabs above this get >= 2 grid blocks (v7x 2 TCs)
_NEG_F32 = -3.0e38               # only used inside the kernel for the masked max


def _round_up(x, m):
    return ((x + m - 1) // m) * m


def _entropy_kernel(sv_ref, out_ref, *, n_valid, n_rows, block_rows, log_eps):
    """Row-wise softmax entropy over a (block_rows, n_pad) slab of singular values.

    Lanes >= n_valid and rows >= n_rows are padding (content irrelevant) and are
    masked with iota comparisons, contributing exactly zero entropy.  Emits a
    sublane-aligned (1, 8, n_pad) partial; the final reduction happens in XLA.
    """
    pid = pl.program_id(0)
    s = sv_ref[...]                                          # (block_rows, n_pad) f32
    shape = s.shape
    lane = jax.lax.broadcasted_iota(jnp.int32, shape, 1)
    row = jax.lax.broadcasted_iota(jnp.int32, shape, 0) + pid * block_rows
    mask = (lane < n_valid) & (row < n_rows)

    s_masked = jnp.where(mask, s, jnp.float32(_NEG_F32))
    m = jnp.max(s_masked, axis=-1, keepdims=True)            # 1 lane-reduce / row (XLU)
    e = jnp.where(mask, jnp.exp(s - m), 0.0)                 # 1 exp / element (EUP)
    denom = jnp.sum(e, axis=-1, keepdims=True)               # 1 lane-reduce / row (XLU)
    inv = pl.reciprocal(denom)                               # exact; 1 per row
    # log(prob) == (s - m) - log(denom); clamp matches torch .clamp(min=eps).log()
    logp = jnp.maximum((s - m) - jnp.log(denom), log_eps)    # 1 log / row
    contrib = jnp.where(mask, -(e * inv) * logp, 0.0)        # -prob * log(clamp(prob))

    # Reduce rows only down to 8 sublanes -> (8, 128k)-aligned unmasked store tile.
    out_ref[...] = jnp.sum(
        contrib.reshape(block_rows // _SUBLANE, _SUBLANE, shape[-1]), axis=0
    )[None]


def _entropy_sum_bucket(sv, n_valid, eps):
    """sv: (b, n_valid) f32 singular values. Returns scalar sum of row entropies."""
    b = sv.shape[0]
    n_pad = _round_up(max(int(n_valid), 1), _LANE)
    # Zero lane-padding only (content is masked in-kernel).
    slab = jnp.pad(sv.astype(jnp.float32), ((0, 0), (0, n_pad - sv.shape[1])))

    row_bytes = n_pad * 4
    cap_rows = max(_SUBLANE, (_BLOCK_BYTES // row_bytes) // _SUBLANE * _SUBLANE)
    b8 = _round_up(b, _SUBLANE)
    block_rows = min(b8, cap_rows)
    # Large single-block slabs: force >= 2 "parallel" blocks so v7x's 2nd TC works.
    if b8 * row_bytes > _SPLIT_BYTES and block_rows == b8:
        block_rows = _round_up((b8 + 1) // 2, _SUBLANE)
    b_pad = _round_up(b8, block_rows)
    if b_pad != b:
        slab = jnp.pad(slab, ((0, b_pad - b), (0, 0)))       # rows masked in-kernel

    num_blocks = b_pad // block_rows
    # Explicit scoped-VMEM budget: double-buffered input + output block + margin.
    vmem_bytes = int(2 * block_rows * row_bytes + 2 * _SUBLANE * row_bytes + (4 << 20))

    partials = pl.pallas_call(
        functools.partial(_entropy_kernel, n_valid=int(n_valid), n_rows=int(b),
                          block_rows=int(block_rows), log_eps=math.log(eps)),
        out_shape=jax.ShapeDtypeStruct((num_blocks, _SUBLANE, n_pad), jnp.float32),
        grid_spec=pltpu.PrefetchScalarGridSpec(
            num_scalar_prefetch=0,
            grid=(num_blocks,),
            in_specs=[pl.BlockSpec((block_rows, n_pad), lambda i: (i, 0))],
            out_specs=pl.BlockSpec((1, _SUBLANE, n_pad), lambda i: (i, 0, 0)),
        ),
        compiler_params=pltpu.CompilerParams(
            dimension_semantics=("parallel",),
            vmem_limit_bytes=vmem_bytes),
    )(slab)
    return jnp.sum(partials)


def _singular_values(mat_batch):
    """mat_batch: (B, r, c) f32 -> (B, min(r, c)) singular values.

    Uses sqrt(eigvalsh(Gram)) instead of SVD: the Gram matmul runs on the MXU and
    batched symmetric eig is far cheaper than SVD on TPU.  Order is irrelevant for
    softmax entropy; negative rounding noise is clamped to 0.
    """
    _, r, c = mat_batch.shape
    if r <= c:
        gram = jnp.einsum('bik,bjk->bij', mat_batch, mat_batch,
                          preferred_element_type=jnp.float32)   # (B, r, r)
    else:
        gram = jnp.einsum('bki,bkj->bij', mat_batch, mat_batch,
                          preferred_element_type=jnp.float32)   # (B, c, c)
    # TODO(synk): eigvalsh/svdvals have no Pallas equivalent; this stays in XLA.
    ev = jnp.linalg.eigvalsh(gram)
    return jnp.sqrt(jnp.maximum(ev, 0.0))


class SpectralEntropyLoss:
    def __init__(self, weight: float = 0.02, eps: float = 1e-16, update_very: int = 4):
        self.eps = eps
        self.update_rate = update_very
        self.weight = weight
        # NOTE: Python-side counter (matches torch). Do not wrap __call__ in jax.jit
        # directly, or `t` (and the gate) is baked in at trace time.
        self.t = 1

    def __call__(self, params):
        gate_open = (self.t % self.update_rate == 0)
        self.t += 1
        if not gate_open:
            # Short-circuit: skip Gram/eig + kernel entirely on gated steps.
            return self.weight * jnp.float32(0.0)

        # 1) One batched Gram+eig dispatch per distinct trailing (row, col) shape.
        shape_groups = {}
        for p in params:
            if p.ndim < 2:
                continue
            *_, r, c = p.shape
            shape_groups.setdefault((int(r), int(c)), []).append(
                jnp.reshape(p, (-1, r, c)).astype(jnp.float32))
        if not shape_groups:
            return self.weight * jnp.float32(0.0)

        # 2) Bucket singular-value rows by their valid width; one pallas_call per
        #    bucket, padded only to that bucket's own multiple of 128 lanes.
        width_buckets = {}
        for (r, c), mats in shape_groups.items():
            stacked = mats[0] if len(mats) == 1 else jnp.concatenate(mats, axis=0)
            sv = _singular_values(stacked)                    # (B, min(r, c))
            width_buckets.setdefault(min(r, c), []).append(sv)

        total = jnp.float32(0.0)
        for n_valid, svs in width_buckets.items():
            sv = svs[0] if len(svs) == 1 else jnp.concatenate(svs, axis=0)
            total = total + _entropy_sum_bucket(sv, n_valid, self.eps)
        return self.weight * total


def _ref_loss(params, weight, eps):
    """Pure-JAX reference of the torch forward (ungated), using true SVD."""
    total = jnp.float32(0.0)
    for p in params:
        if p.ndim < 2:
            continue
        *_, r, c = p.shape
        m = p.reshape(-1, r, c).astype(jnp.float32)
        sv = jnp.linalg.svd(m, compute_uv=False)
        prob = jax.nn.softmax(sv, axis=-1)
        total = total + jnp.sum(-prob * jnp.log(jnp.maximum(prob, eps)))
    return weight * total


if __name__ == "__main__":
    key = jax.random.PRNGKey(0)
    k1, k2, k3 = jax.random.split(key, 3)
    # Synthetic "model" parameters (deterministic, small).
    params = [
        jax.random.normal(k1, (8, 4, 3, 3), dtype=jnp.float32) * 0.1,  # conv OIHW
        jax.random.normal(k2, (32, 16), dtype=jnp.float32) * 0.1,      # linear (out, in)
        jax.random.normal(k3, (32,), dtype=jnp.float32) * 0.1,         # bias (skipped)
    ]

    crit = SpectralEntropyLoss(weight=0.02, eps=1e-16, update_very=4)
    losses = [crit(params) for _ in range(4)]   # t = 1..4; only the 4th is non-zero
    for l in losses:
        jax.block_until_ready(l)

    # Gate check (t=1..3 -> 0) and numeric check against pure-JAX SVD reference at t=4.
    assert all(float(l) == 0.0 for l in losses[:3])
    ref = jax.block_until_ready(_ref_loss(params, 0.02, 1e-16))
    rel = abs(float(losses[3]) - float(ref)) / max(1.0, abs(float(ref)))
    assert rel <= 2e-3, (float(losses[3]), float(ref))

    print("KERNEL_OK")
</pallas_src>

<mosaic_0001>
module attributes {stable_mosaic.version = 11 : i64} {
  func.func @_entropy_kernel(%arg0: i32, %arg1: memref<32x128xf32, #tpu.memory_space<vmem>>, %arg2: memref<1x8x128xf32, #tpu.memory_space<vmem>>) attributes {dimension_semantics = [#tpu.dimension_semantics<parallel>], iteration_bounds = array<i64: 1>, scalar_prefetch = 0 : i64, scratch_operands = 0 : i64, tpu.core_type = #tpu.core_type<tc>, window_params = [{transform_indices = @transform_0, window_bounds = array<i64: 32, 128>}, {transform_indices = @transform_1, window_bounds = array<i64: 1, 8, 128>}]} {
    %c0 = arith.constant 0 : index
    %c0_0 = arith.constant 0 : index
    %0 = vector.load %arg1[%c0, %c0_0] : memref<32x128xf32, #tpu.memory_space<vmem>>, vector<32x128xf32>
    %1 = tpu.iota {dimensions = array<i32: 1>} : vector<32x128xi32>
    %2 = tpu.iota {dimensions = array<i32: 0>} : vector<32x128xi32>
    %c32_i32 = arith.constant 32 : i32
    %3 = arith.muli %arg0, %c32_i32 : i32
    %4 = vector.broadcast %3 : i32 to vector<32x128xi32>
    %5 = arith.addi %2, %4 : vector<32x128xi32>
    %c3_i32 = arith.constant 3 : i32
    %6 = vector.broadcast %c3_i32 : i32 to vector<32x128xi32>
    %7 = arith.cmpi slt, %1, %6 : vector<32x128xi32>
    %c32_i32_1 = arith.constant 32 : i32
    %8 = vector.broadcast %c32_i32_1 : i32 to vector<32x128xi32>
    %9 = arith.cmpi slt, %5, %8 : vector<32x128xi32>
    %10 = arith.andi %7, %9 : vector<32x128xi1>
    %cst = arith.constant -3.000000e+38 : f32
    %11 = vector.broadcast %cst : f32 to vector<32x128xf32>
    %12 = arith.select %10, %0, %11 : vector<32x128xi1>, vector<32x128xf32>
    %cst_2 = arith.constant dense<0xFF800000> : vector<32xf32>
    %13 = vector.multi_reduction <maximumf>, %12, %cst_2 [1] : vector<32x128xf32> to vector<32xf32>
    %14 = vector.shape_cast %13 : vector<32xf32> to vector<32x1xf32>
    %15 = vector.broadcast %14 : vector<32x1xf32> to vector<32x128xf32>
    %16 = arith.subf %0, %15 : vector<32x128xf32>
    %17 = math.exp %16 : vector<32x128xf32>
    %cst_3 = arith.constant 0.000000e+00 : f32
    %18 = vector.broadcast %cst_3 : f32 to vector<32x128xf32>
    %19 = arith.select %10, %17, %18 : vector<32x128xi1>, vector<32x128xf32>
    %cst_4 = arith.constant dense<0.000000e+00> : vector<32xf32>
    %20 = vector.multi_reduction <add>, %19, %cst_4 [1] : vector<32x128xf32> to vector<32xf32>
    %21 = vector.shape_cast %20 : vector<32xf32> to vector<32x1xf32>
    %22 = tpu.reciprocal %21 : vector<32x1xf32> -> vector<32x1xf32>
    %23 = vector.broadcast %14 : vector<32x1xf32> to vector<32x128xf32>
    %24 = arith.subf %0, %23 : vector<32x128xf32>
    %25 = math.log %21 : vector<32x1xf32>
    %26 = vector.broadcast %25 : vector<32x1xf32> to vector<32x128xf32>
    %27 = arith.subf %24, %26 : vector<32x128xf32>
    %cst_5 = arith.constant -36.841362 : f32
    %28 = vector.broadcast %cst_5 : f32 to vector<32x128xf32>
    %29 = arith.maximumf %27, %28 : vector<32x128xf32>
    %30 = vector.broadcast %22 : vector<32x1xf32> to vector<32x128xf32>
    %31 = arith.mulf %19, %30 : vector<32x128xf32>
    %cst_6 = arith.constant 0.000000e+00 : f32
    %32 = vector.broadcast %cst_6 : f32 to vector<32x128xf32>
    %33 = arith.subf %32, %31 : vector<32x128xf32>
    %34 = arith.mulf %33, %29 : vector<32x128xf32>
    %cst_7 = arith.constant 0.000000e+00 : f32
    %35 = vector.broadcast %cst_7 : f32 to vector<32x128xf32>
    %36 = arith.select %10, %34, %35 : vector<32x128xi1>, vector<32x128xf32>
    %37 = vector.shape_cast %36 : vector<32x128xf32> to vector<4x8x128xf32>
    %cst_8 = arith.constant dense<0.000000e+00> : vector<8x128xf32>
    %38 = vector.multi_reduction <add>, %37, %cst_8 [0] : vector<4x8x128xf32> to vector<8x128xf32>
    %39 = vector.shape_cast %38 : vector<8x128xf32> to vector<1x8x128xf32>
    %c0_9 = arith.constant 0 : index
    %c0_10 = arith.constant 0 : index
    %c0_11 = arith.constant 0 : index
    %40 = vector.load %arg2[%c0_9, %c0_10, %c0_11] : memref<1x8x128xf32, #tpu.memory_space<vmem>>, vector<1x8x128xf32>
    tpu.vector_store %arg2[%c0_9, %c0_10, %c0_11], %39 {strides = array<i32>} : memref<1x8x128xf32, #tpu.memory_space<vmem>>, vector<1x8x128xf32>,
    return
  }
  func.func @transform_0(%arg0: i32) -> (i32, i32) {
    %c0_i32 = arith.constant 0 : i32
    %c0_i32_0 = arith.constant 0 : i32
    return %arg0, %c0_i32 : i32, i32
  }
  func.func @transform_1(%arg0: i32) -> (i32, i32, i32) {
    %c0_i32 = arith.constant 0 : i32
    %c0_i32_0 = arith.constant 0 : i32
    %c0_i32_1 = arith.constant 0 : i32
    return %arg0, %c0_i32, %c0_i32_0 : i32, i32, i32
  }
}

</mosaic_0001>

<bundles_post_ra>
// kernel: tpu_custom_call.1
= control target key start
LH: loop header
LB: loop body
LE: loop exit
PB: predicated region body
PF: predicated region fallthrough
CT: control target
= control target key end

     0   :  { %6 = vsyncpa [#allocation3], 0  ;;  %s381_s0 = inlined_call_operand.hbm [shape: f32[32,128], index: 0, kind: input, shape index: {}]   ;;  %s382_s1 = inlined_call_operand.hbm [shape: f32[1,8,128], index: 1, kind: output, shape index: {}]  }
   0x1   :  { %7 = vsyncpa [#allocation4], 0  ;;  %s12_s8 = sshll.u32 %s381_s0, 4  ;;  %s276_s9 = smov [#allocation2]   ;;  %s13_s8 = int_to_ptr.hbm [resolvable:$true] %s12_s8 }
   0x2   :  { %s14_s10 = sshll.u32 %s276_s9, 4  ;;  %s277_s11 = smov 128   ;;  %s15_s10 = int_to_ptr.vmem [resolvable:$true] %s14_s10 }
   0x3   :  { %s278_s12 = smov 8  }
   0x4   :  { %20 = dma.hbm_to_vmem [thread:$0]  %s13_s8, 512, %s15_s10, [#allocation3], %s277_s11, %s277_s11, %s278_s12  }
   0x5   :  { %272 = dma.done.wait [#allocation3], 512  }
   0x6   :  { %273 = vsyncadd [#allocation3], 4294966784  ;;  %v29_v0 = vlaneseq  ;;  %v27_v2 = vld [vmem:[#allocation2 + $0x10] sm:$0xff]  ;;  %v25_v3 = vld [vmem:[#allocation2] sm:$0xff]  ;;  %s279_s0 = smov [#allocation5]   ;;  %s186_s16 = sshll.u32 %s382_s1, 4  ;;  %s187_s16 = int_to_ptr.hbm [resolvable:$true] %s186_s16 }
   0x7   :  { %v28_v6 = vld [vmem:[#allocation2 + $0x18] sm:$0xff]  ;;  %v26_v7 = vld [vmem:[#allocation2 + $0x8] sm:$0xff]  ;;  %s184_s13 = sshll.u32 %s279_s0, 4  ;;  %s185_s13 = int_to_ptr.vmem [resolvable:$true] %s184_s13 }
   0x8   :  { %v293_v1 = vand.u32 127, %v29_v0 }
   0xa   :  { %vm42_vm0 = vcmp.lt.s32.totalorder %v293_v1, 3 }
   0xb   :  { %v53_v4 = vsel %vm42_vm0, %v27_v2, -3e+38  ;;  %v51_v5 = vsel %vm42_vm0, %v25_v3, -3e+38  ;;  %v54_v8 = vsel %vm42_vm0, %v28_v6, -3e+38 }
   0xc   :  { %59 = vmax.xlane.f32.xlu1 %v53_v4  ;;  %55 = vmax.xlane.f32.xlu0 %v51_v5  ;;  %v52_v9 = vsel %vm42_vm0, %v26_v7, -3e+38 }
  0x14   :  { %61 = vmax.xlane.f32.xlu1 %v54_v8  ;;  %57 = vmax.xlane.f32.xlu0 %v52_v9 }
  0x7f   :  { %v60_v10 = vpop.xlane.xlu1 %59  ;;  %v56_v11 = vpop.xlane.xlu0 %55 }
  0x80   :  { %v304_v12 = vsub.f32 %v27_v2, %v60_v10  ;;  %v306_v13 = vsub.f32 %v25_v3, %v56_v11 }
  0x82   :  { %v71_v14 = vmul.f32 1.442695, %v304_v12  ;;  %v67_v15 = vmul.f32 1.442695, %v306_v13 }
  0x84   :  { %200 = vpow2.f32 %v71_v14 }
  0x85   :  { %202 = vpow2.f32 %v67_v15 }
  0x87   :  { %v62_v16 = vpop.xlane.xlu1 %61  ;;  %v58_v17 = vpop.xlane.xlu0 %57 }
  0x88   :  { %v310_v18 = vsub.f32 %v28_v6, %v62_v16  ;;  %v312_v19 = vsub.f32 %v26_v7, %v58_v17 }
  0x8a   :  { %v201_v20 = vpop.eup %200  ;;  %v73_v21 = vmul.f32 1.442695, %v310_v18  ;;  %v69_v22 = vmul.f32 1.442695, %v312_v19 }
  0x8b   :  { %v203_v23 = vpop.eup %202  ;;  %v318_v24 = vsel %vm42_vm0, %v201_v20, 0.0 }
  0x8c   :  { %204 = vpow2.f32 %v73_v21  ;;  %83 = vadd.xlane.f32.xlu0 %v318_v24  ;;  %v323_v25 = vsel %vm42_vm0, %v203_v23, 0.0 }
  0x8d   :  { %206 = vpow2.f32 %v69_v22  ;;  %79 = vadd.xlane.f32.xlu2 %v323_v25 }
  0x92   :  { %v205_v26 = vpop.eup %204 }
  0x93   :  { %v207_v27 = vpop.eup %206  ;;  %v328_v28 = vsel %vm42_vm0, %v205_v26, 0.0 }
  0x94   :  { %85 = vadd.xlane.f32.xlu1 %v328_v28  ;;  %v333_v29 = vsel %vm42_vm0, %v207_v27, 0.0 }
  0x95   :  { %81 = vadd.xlane.f32.xlu2 %v333_v29 }
  0xff   :  { %v84_v30 = vpop.xlane.xlu0 %83 }
 0x100   :  { %v80_v31 = vpop.xlane.xlu2 %79  ;;  %208 = vrcp.f32 %v84_v30  ;;  %v124_v42 = vand.u32 2147483647, %v84_v30  ;;  %v126_v44 = vand.u32 2147483648, %v84_v30  ;;  %vm120_vm5 = vweird.f32 %v84_v30 }
 0x101   :  { %210 = vrcp.f32 %v80_v31  ;;  %vm92_vm2 = vweird.f32 %v80_v31  ;;  %v98_v43 = vand.u32 2147483648, %v80_v31  ;;  %v96_v47 = vand.u32 2147483647, %v80_v31 }
 0x102   :  { %vm350_vm7 = vcmp.eq.f32.partialorder %v124_v42, 8.507059e+37  ;;  %v127_v59 = vor.u32 1.1754944e-38, %v126_v44 }
 0x103   :  { %v99_v56 = vor.u32 1.1754944e-38, %v98_v43  ;;  %vm97_vm8 = vcmp.eq.f32.partialorder %v96_v47, 8.507059e+37 }
 0x106   :  { %v209_v32 = vpop.eup %208 }
 0x107   :  { %v211_v33 = vpop.eup %210  ;;  %v116_v34 = vmul.f32 %v209_v32, %v84_v30  ;;  %v86_v35 = vpop.xlane.xlu1 %85  ;;  %vm121_vm3 = vweird.f32 %v209_v32 }
 0x108   :  { %v88_v36 = vmul.f32 %v211_v33, %v80_v31  ;;  %212 = vrcp.f32 %v86_v35  ;;  %v336_v37 = vpop.xlane.xlu2 %81  ;;  %vm93_vm1 = vweird.f32 %v211_v33  ;;  %v140_v54 = vand.u32 2147483648, %v86_v35  ;;  %vm346_vm6 = vmor %vm120_vm5, %vm121_vm3 }
 0x109   :  { %214 = vlog2.f32 %v80_v31  ;;  %v117_v38 = vsub.f32 1.0, %v116_v34  ;;  %vm340_vm4 = vmor %vm92_vm2, %vm93_vm1  ;;  %v138_v4 = vand.u32 2147483647, %v86_v35  ;;  %vm134_vm10 = vweird.f32 %v86_v35 }
 0x10a   :  { %v89_v39 = vsub.f32 1.0, %v88_v36  ;;  %216 = vlog2.f32 %v84_v30  ;;  %v141_v6 = vor.u32 1.1754944e-38, %v140_v54  ;;  %v110_v11 = vand.u32 2147483647, %v336_v37 }
 0x10b   :  { %v118_v40 = vmul.f32 %v209_v32, %v117_v38  ;;  %218 = vrcp.f32 %v336_v37  ;;  %v112_v14 = vand.u32 2147483648, %v336_v37  ;;  %vm139_vm13 = vcmp.eq.f32.partialorder %v138_v4, 8.507059e+37 }
 0x10c   :  { %v90_v41 = vmul.f32 %v211_v33, %v89_v39  ;;  %220 = vlog2.f32 %v336_v37  ;;  %vm106_vm14 = vweird.f32 %v336_v37  ;;  %vm111_vm1 = vcmp.eq.f32.partialorder %v110_v11, 8.507059e+37 }
 0x10d   :  { %v119_v48 = vadd.f32 %v209_v32, %v118_v40  ;;  %222 = vlog2.f32 %v86_v35  ;;  %v113_v31 = vor.u32 1.1754944e-38, %v112_v14 }
 0x10e   :  { %v213_v45 = vpop.eup %212  ;;  %v91_v46 = vadd.f32 %v211_v33, %v90_v41 }
 0x10f   :  { %v215_v49 = vpop.eup %214  ;;  %v130_v51 = vmul.f32 %v213_v45, %v86_v35  ;;  %v123_v62 = vsel %vm346_vm6, %v209_v32, %v119_v48  ;;  %vm135_vm9 = vweird.f32 %v213_v45 }
 0x110   :  { %v217_v52 = vpop.eup %216  ;;  %v95_v53 = vsel %vm340_vm4, %v211_v33, %v91_v46  ;;  %v144_v61 = vmul.f32 0.6931472, %v215_v49  ;;  %v128_v9 = vsel %vm350_vm7, %v127_v59, %v123_v62  ;;  %vm136_vm11 = vmor %vm134_vm10, %vm135_vm9 }
 0x111   :  { %v219_v55 = vpop.eup %218  ;;  %v131_v60 = vsub.f32 1.0, %v130_v51  ;;  %v100_v2 = vsel %vm97_vm8, %v99_v56, %v95_v53  ;;  %v148_v5 = vmul.f32 0.6931472, %v217_v52  ;;  %v161_v22 = vmul.f32 %v128_v9, %v318_v24 }
 0x112   :  { %v102_v63 = vmul.f32 %v219_v55, %v336_v37  ;;  %v221_v0 = vpop.eup %220  ;;  %vm107_vm12 = vweird.f32 %v219_v55  ;;  %v159_v17 = vmul.f32 %v100_v2, %v323_v25  ;;  %v151_v21 = vsub.f32 %v306_v13, %v144_v61 }
 0x113   :  { %v132_v3 = vmul.f32 %v213_v45, %v131_v60  ;;  %v223_v8 = vpop.eup %222  ;;  %v146_v16 = vmul.f32 0.6931472, %v221_v0  ;;  %v153_v30 = vsub.f32 %v304_v12, %v148_v5  ;;  %vm108_vm15 = vmor %vm106_vm14, %vm107_vm12  ;;  %v165_v37 = vsub.f32 0.0, %v161_v22 }
 0x114   :  { %v103_v7 = vsub.f32 1.0, %v102_v63  ;;  %v150_v26 = vmul.f32 0.6931472, %v223_v8  ;;  %v163_v34 = vsub.f32 0.0, %v159_v17  ;;  %v155_v24 = vmax.f32 %v151_v21, -36.841362 }
 0x115   :  { %v133_v10 = vadd.f32 %v213_v45, %v132_v3  ;;  %v152_v33 = vsub.f32 %v312_v19, %v146_v16  ;;  %v157_v38 = vmax.f32 %v153_v30, -36.841362 }
 0x116   :  { %v104_v15 = vmul.f32 %v219_v55, %v103_v7  ;;  %v154_v13 = vsub.f32 %v310_v18, %v150_v26  ;;  %v167_v41 = vmul.f32 %v163_v34, %v155_v24 }
 0x117   :  { %v137_v20 = vsel %vm136_vm11, %v213_v45, %v133_v10  ;;  %v156_v39 = vmax.f32 %v152_v33, -36.841362  ;;  %v169_v44 = vmul.f32 %v165_v37, %v157_v38 }
 0x118   :  { %v142_v23 = vsel %vm139_vm13, %v141_v6, %v137_v20  ;;  %v105_v27 = vadd.f32 %v219_v55, %v104_v15  ;;  %v158_v42 = vmax.f32 %v154_v13, -36.841362  ;;  %v171_v19 = vsel %vm42_vm0, %v167_v41, 0.0 }
 0x119   :  { %v162_v25 = vmul.f32 %v142_v23, %v328_v28  ;;  %v173_v18 = vsel %vm42_vm0, %v169_v44, 0.0 }
 0x11a   :  { %v109_v32 = vsel %vm108_vm15, %v219_v55, %v105_v27 }
 0x11b   :  { %v114_v35 = vsel %vm111_vm1, %v113_v31, %v109_v32  ;;  %v166_v12 = vsub.f32 0.0, %v162_v25 }
 0x11c   :  { %v160_v36 = vmul.f32 %v114_v35, %v333_v29 }
 0x11d   :  { %v170_v45 = vmul.f32 %v166_v12, %v158_v42 }
 0x11e   :  { %v164_v40 = vsub.f32 0.0, %v160_v36 }
 0x11f   :  { %v174_v47 = vsel %vm42_vm0, %v170_v45, 0.0 }
 0x120   :  { %v168_v43 = vmul.f32 %v164_v40, %v156_v39 }
 0x122   :  { %v172_v28 = vsel %vm42_vm0, %v168_v43, 0.0 }
 0x123   :  { %v175_v29 = vadd.f32 %v172_v28, %v171_v19 }
 0x125   :  { %v176_v46 = vadd.f32 %v175_v29, %v173_v18 }
 0x127   :  { %v177_v48 = vadd.f32 %v176_v46, %v174_v47 }
 0x129   :  { %178 = vst [vmem:[#allocation5] sm:$0xff] %v177_v48 }
 0x12a   :  { %189 = dma.vmem_to_hbm [thread:$0]  %s185_s13, 128, %s187_s16, [#allocation4]  }
 0x12b   :  { %274 = dma.done.wait [#allocation4], 128  }
 0x12c   :  { %275 = vsyncadd [#allocation4], 4294967168 }
 0x12d   :  { %194 = vsyncpa [#allocation3], 1 }
 0x12e   :  { %195 = vsyncpa [#allocation4], 1 }

</bundles_post_ra>
